<compile_context>
chip_gen: v7x
topology: tpu7x:2x2x1
jax: 0.10.0
libtpu: 0.0.40
codegen_flags: <defaults>
</compile_context>

<pallas_src>
import functools

import jax
import jax.numpy as jnp
from jax.experimental import pallas as pl
from jax.experimental.pallas import tpu as pltpu

LANE = 128  # TPU lane width; output last dim is padded to a multiple of this.


def _round_up(x, m):
    return ((x + m - 1) // m) * m


def actor_kernel(x_ref, w1_ref, b1_ref, w2_ref, b2_ref, w3_ref, b3_ref, o_ref):
    """One (TB, .) batch tile: fused 3-layer MLP + softmax, all in VMEM."""
    x = x_ref[...]

    # fc1 + ReLU  (f32 x f32; K=8 so FLOPs are negligible, no cast needed)
    h1 = jnp.dot(x, w1_ref[...], preferred_element_type=jnp.float32) + b1_ref[...]
    h1 = jnp.maximum(h1, 0.0)

    # fc2 + ReLU  (bf16 operands, f32 MXU accumulation)
    h2 = jnp.dot(h1.astype(w2_ref.dtype), w2_ref[...],
                 preferred_element_type=jnp.float32) + b2_ref[...]
    h2 = jnp.maximum(h2, 0.0)

    # fc3 logits. Padded action lanes carry f32 bias -1e30 -> exp() == 0.
    logits = jnp.dot(h2.astype(w3_ref.dtype), w3_ref[...],
                     preferred_element_type=jnp.float32) + b3_ref[...]

    # Numerically-stable softmax over the (lane-padded) action axis.
    m = jnp.max(logits, axis=-1, keepdims=True)
    e = jnp.exp(logits - m)
    denom = jnp.sum(e, axis=-1, keepdims=True)
    # Exact per-row divide (tb values -> essentially free) so probs sum to 1,
    # which downstream Categorical log_prob / PPO ratios rely on.
    probs = e * (1.0 / denom)
    o_ref[...] = probs.astype(o_ref.dtype)


def prepare_actor_params(params, n_actions, use_bf16=True):
    """One-time parameter prep (hoisted out of the per-step hot path).

    Pads fc3 to a lane-dense 128-wide output (padded lanes get bias -1e30 so
    softmax over real actions is exact) and casts the big weights to bf16.
    Call this once whenever the parameters change, not every forward.
    """
    w1, b1, w2, b2, w3, b3 = params
    a_pad = _round_up(n_actions, LANE)
    w3p = jnp.pad(w3, ((0, 0), (0, a_pad - n_actions)))
    b3p = jnp.pad(b3, ((0, 0), (0, a_pad - n_actions)), constant_values=-1e30)

    mm = jnp.bfloat16 if use_bf16 else jnp.float32
    # w1 stays f32: x stays f32 and fc1's FLOPs are negligible (K = input_dims).
    # Biases stay f32; b3p MUST stay f32 for the -1e30 padding trick.
    return (w1, b1, w2.astype(mm), b2, w3p.astype(mm), b3p)


def _choose_tile_batch(batch, tile_batch):
    """Pick the batch-tile size.

    * >= 2 grid steps whenever the batch allows it, so the 'parallel' batch
      axis shards across both TensorCores on v7x.
    * Bigger tiles for big batches (per-grid-step overhead ~0.35 us dominates);
      VMEM is not binding here (weights ~200 KiB, tile buffers ~1 MiB at 1024).
    """
    pb8 = _round_up(batch, 8)
    if pb8 <= 2 * tile_batch:
        tb = max(8, _round_up((pb8 + 1) // 2, 8))  # two roughly equal tiles
    else:
        tb = tile_batch
        # Large batches: fewer, bigger tiles (up to 1024 rows).
        while pb8 // tb >= 8 and tb < 1024:
            tb *= 2
    return _round_up(tb, 8)


@functools.partial(jax.jit,
                   static_argnames=("n_actions", "tile_batch", "out_dtype"))
def actor_forward(state, prepared_params, n_actions, tile_batch=256,
                  out_dtype=jnp.float32):
    """Softmax action probabilities, shape [batch, n_actions].

    `prepared_params` must come from prepare_actor_params().
    `out_dtype=jnp.bfloat16` halves the dominant HBM write stream (best win on
    v5e); keep f32 if downstream log_prob precision matters.
    """
    w1, b1, w2, b2, w3p, b3p = prepared_params
    batch, in_dim = state.shape
    h1_dim = w1.shape[1]
    h2_dim = w2.shape[1]
    a_pad = w3p.shape[1]

    # ---- batch tiling / padding -------------------------------------------
    tb = _choose_tile_batch(batch, tile_batch)
    pb = _round_up(batch, tb)
    x = jnp.pad(state, ((0, pb - batch), (0, 0)))   # x stays f32 (no cast)

    grid = (pb // tb,)

    # x / out: tiled over batch.  Weights & biases: constant (0, 0) block index
    # -> fetched once, VMEM-resident for all grid steps.
    in_specs = [
        pl.BlockSpec((tb, in_dim), lambda i: (i, 0)),
        pl.BlockSpec((in_dim, h1_dim), lambda i: (0, 0)),
        pl.BlockSpec((1, h1_dim), lambda i: (0, 0)),
        pl.BlockSpec((h1_dim, h2_dim), lambda i: (0, 0)),
        pl.BlockSpec((1, h2_dim), lambda i: (0, 0)),
        pl.BlockSpec((h2_dim, a_pad), lambda i: (0, 0)),
        pl.BlockSpec((1, a_pad), lambda i: (0, 0)),
    ]
    out_specs = pl.BlockSpec((tb, a_pad), lambda i: (i, 0))

    out_itemsize = jnp.dtype(out_dtype).itemsize
    flops = 2 * pb * (in_dim * h1_dim + h1_dim * h2_dim + h2_dim * a_pad)
    transcendentals = pb * a_pad + pb  # exp + per-row reciprocal
    bytes_accessed = (
        x.size * x.dtype.itemsize
        + sum(a.size * a.dtype.itemsize for a in (w1, b1, w2, b2, w3p, b3p))
        + pb * a_pad * out_itemsize
    )

    probs = pl.pallas_call(
        actor_kernel,
        out_shape=jax.ShapeDtypeStruct((pb, a_pad), out_dtype),
        grid=grid,
        in_specs=in_specs,
        out_specs=out_specs,
        compiler_params=pltpu.CompilerParams(
            dimension_semantics=("parallel",)),  # batch axis -> both TCs on v7x
        cost_estimate=pl.CostEstimate(
            flops=flops,
            transcendentals=transcendentals,
            bytes_accessed=bytes_accessed),
    )(x, w1, b1, w2, b2, w3p, b3p)

    return probs[:batch, :n_actions]


def init_linear(key, fan_in, fan_out):
    """PyTorch nn.Linear default init: U(-1/sqrt(fan_in), 1/sqrt(fan_in))."""
    kw, kb = jax.random.split(key)
    bound = 1.0 / jnp.sqrt(jnp.float32(fan_in))
    w = jax.random.uniform(kw, (fan_in, fan_out), jnp.float32, -bound, bound)
    b = jax.random.uniform(kb, (1, fan_out), jnp.float32, -bound, bound)
    return w, b


def actor_reference(state, params, use_bf16=True):
    """Pure-JAX reference mirroring the kernel's math (f32 fc1, bf16 fc2/fc3)."""
    w1, b1, w2, b2, w3, b3 = params
    cd = jnp.bfloat16 if use_bf16 else jnp.float32
    h1 = jnp.maximum(
        jnp.dot(state, w1, preferred_element_type=jnp.float32) + b1, 0.0)
    h2 = jnp.maximum(
        jnp.dot(h1.astype(cd), w2.astype(cd),
                preferred_element_type=jnp.float32) + b2, 0.0)
    logits = jnp.dot(h2.astype(cd), w3.astype(cd),
                     preferred_element_type=jnp.float32) + b3
    return jax.nn.softmax(logits, axis=-1)


if __name__ == "__main__":
    # Small, module-consistent shapes: a PPO update minibatch of gym-style states.
    batch = 200          # tile = 104 -> 2 grid steps (both TCs busy on v7x)
    input_dims = 8
    fc1_dims = 256       # module defaults
    fc2_dims = 256
    n_actions = 4

    key = jax.random.PRNGKey(0)
    k_x, k1, k2, k3 = jax.random.split(key, 4)

    state = jax.random.normal(k_x, (batch, input_dims), jnp.float32)
    w1, b1 = init_linear(k1, input_dims, fc1_dims)
    w2, b2 = init_linear(k2, fc1_dims, fc2_dims)
    w3, b3 = init_linear(k3, fc2_dims, n_actions)
    params = (w1, b1, w2, b2, w3, b3)

    # Hoisted one-time prep (pad fc3 to 128 lanes, cast big weights to bf16).
    prepared = prepare_actor_params(params, n_actions, use_bf16=True)
    prepared = jax.tree_util.tree_map(jax.block_until_ready, prepared)

    ref = actor_reference(state, params, use_bf16=True)

    # f32-output path (default).
    probs = actor_forward(state, prepared, n_actions)
    probs = jax.block_until_ready(probs)
    assert probs.shape == (batch, n_actions)
    assert jnp.allclose(probs, ref, atol=1e-4, rtol=1e-3), float(
        jnp.max(jnp.abs(probs - ref)))
    # Exact softmax divide -> rows sum to 1 to f32 precision.
    assert jnp.allclose(jnp.sum(probs, axis=-1), 1.0, atol=1e-4)

    # bf16-output path (halves the dominant HBM write stream; v5e-friendly).
    probs_bf16 = actor_forward(state, prepared, n_actions,
                               out_dtype=jnp.bfloat16)
    probs_bf16 = jax.block_until_ready(probs_bf16)
    assert probs_bf16.dtype == jnp.bfloat16
    assert jnp.allclose(probs_bf16.astype(jnp.float32), ref,
                        atol=5e-3, rtol=3e-2)

    # TODO(synk): torch.distributions.Categorical (sample/log_prob/entropy) is a
    # distribution wrapper, not a tensor op; the kernel returns its `probs`.
    print("KERNEL_OK")
</pallas_src>

<mosaic_0001>
module attributes {stable_mosaic.version = 11 : i64} {
  func.func @actor_kernel(%arg0: i32, %arg1: memref<104x8xf32, #tpu.memory_space<vmem>>, %arg2: memref<8x256xf32, #tpu.memory_space<vmem>>, %arg3: memref<1x256xf32, #tpu.memory_space<vmem>>, %arg4: memref<256x256xbf16, #tpu.memory_space<vmem>>, %arg5: memref<1x256xf32, #tpu.memory_space<vmem>>, %arg6: memref<256x128xbf16, #tpu.memory_space<vmem>>, %arg7: memref<1x128xf32, #tpu.memory_space<vmem>>, %arg8: memref<104x128xf32, #tpu.memory_space<vmem>>) attributes {dimension_semantics = [#tpu.dimension_semantics<parallel>], iteration_bounds = array<i64: 2>, scalar_prefetch = 0 : i64, scratch_operands = 0 : i64, tpu.core_type = #tpu.core_type<tc>, window_params = [{transform_indices = @transform_0, window_bounds = array<i64: 104, 8>}, {pipeline_mode = #tpu.pipeline_mode<synchronous>, transform_indices = @transform_1, window_bounds = array<i64: 8, 256>}, {pipeline_mode = #tpu.pipeline_mode<synchronous>, transform_indices = @transform_2, window_bounds = array<i64: 1, 256>}, {pipeline_mode = #tpu.pipeline_mode<synchronous>, transform_indices = @transform_3, window_bounds = array<i64: 256, 256>}, {pipeline_mode = #tpu.pipeline_mode<synchronous>, transform_indices = @transform_4, window_bounds = array<i64: 1, 256>}, {pipeline_mode = #tpu.pipeline_mode<synchronous>, transform_indices = @transform_5, window_bounds = array<i64: 256, 128>}, {pipeline_mode = #tpu.pipeline_mode<synchronous>, transform_indices = @transform_6, window_bounds = array<i64: 1, 128>}, {transform_indices = @transform_7, window_bounds = array<i64: 104, 128>}]} {
    %c0 = arith.constant 0 : index
    %c0_0 = arith.constant 0 : index
    %0 = vector.load %arg1[%c0, %c0_0] : memref<104x8xf32, #tpu.memory_space<vmem>>, vector<104x8xf32>
    %c0_1 = arith.constant 0 : index
    %c0_2 = arith.constant 0 : index
    %1 = vector.load %arg2[%c0_1, %c0_2] : memref<8x256xf32, #tpu.memory_space<vmem>>, vector<8x256xf32>
    %cst = arith.constant dense<0.000000e+00> : vector<104x256xf32>
    %2 = tpu.matmul %0, %1, %cst {dimension_numbers = #tpu.dot_dimension_numbers<[1], [0], [0], [1], [0, 0, 1, 1], [], []>} : vector<104x8xf32>, vector<8x256xf32>, vector<104x256xf32> -> vector<104x256xf32>
    %c0_3 = arith.constant 0 : index
    %c0_4 = arith.constant 0 : index
    %3 = vector.load %arg3[%c0_3, %c0_4] : memref<1x256xf32, #tpu.memory_space<vmem>>, vector<1x256xf32>
    %4 = vector.broadcast %3 : vector<1x256xf32> to vector<104x256xf32>
    %5 = arith.addf %2, %4 : vector<104x256xf32>
    %cst_5 = arith.constant 0.000000e+00 : f32
    %6 = vector.broadcast %cst_5 : f32 to vector<104x256xf32>
    %7 = arith.maximumf %5, %6 : vector<104x256xf32>
    %8 = arith.truncf %7 : vector<104x256xf32> to vector<104x256xbf16>
    %c0_6 = arith.constant 0 : index
    %c0_7 = arith.constant 0 : index
    %9 = vector.load %arg4[%c0_6, %c0_7] : memref<256x256xbf16, #tpu.memory_space<vmem>>, vector<256x256xbf16>
    %cst_8 = arith.constant dense<0.000000e+00> : vector<104x256xf32>
    %10 = tpu.matmul %8, %9, %cst_8 {dimension_numbers = #tpu.dot_dimension_numbers<[1], [0], [0], [1], [0, 0, 1, 1], [], []>} : vector<104x256xbf16>, vector<256x256xbf16>, vector<104x256xf32> -> vector<104x256xf32>
    %c0_9 = arith.constant 0 : index
    %c0_10 = arith.constant 0 : index
    %11 = vector.load %arg5[%c0_9, %c0_10] : memref<1x256xf32, #tpu.memory_space<vmem>>, vector<1x256xf32>
    %12 = vector.broadcast %11 : vector<1x256xf32> to vector<104x256xf32>
    %13 = arith.addf %10, %12 : vector<104x256xf32>
    %cst_11 = arith.constant 0.000000e+00 : f32
    %14 = vector.broadcast %cst_11 : f32 to vector<104x256xf32>
    %15 = arith.maximumf %13, %14 : vector<104x256xf32>
    %16 = arith.truncf %15 : vector<104x256xf32> to vector<104x256xbf16>
    %c0_12 = arith.constant 0 : index
    %c0_13 = arith.constant 0 : index
    %17 = vector.load %arg6[%c0_12, %c0_13] : memref<256x128xbf16, #tpu.memory_space<vmem>>, vector<256x128xbf16>
    %cst_14 = arith.constant dense<0.000000e+00> : vector<104x128xf32>
    %18 = tpu.matmul %16, %17, %cst_14 {dimension_numbers = #tpu.dot_dimension_numbers<[1], [0], [0], [1], [0, 0, 1, 1], [], []>} : vector<104x256xbf16>, vector<256x128xbf16>, vector<104x128xf32> -> vector<104x128xf32>
    %c0_15 = arith.constant 0 : index
    %c0_16 = arith.constant 0 : index
    %19 = vector.load %arg7[%c0_15, %c0_16] : memref<1x128xf32, #tpu.memory_space<vmem>>, vector<1x128xf32>
    %20 = vector.broadcast %19 : vector<1x128xf32> to vector<104x128xf32>
    %21 = arith.addf %18, %20 : vector<104x128xf32>
    %cst_17 = arith.constant dense<0xFF800000> : vector<104xf32>
    %22 = vector.multi_reduction <maximumf>, %21, %cst_17 [1] : vector<104x128xf32> to vector<104xf32>
    %23 = vector.shape_cast %22 : vector<104xf32> to vector<104x1xf32>
    %24 = vector.broadcast %23 : vector<104x1xf32> to vector<104x128xf32>
    %25 = arith.subf %21, %24 : vector<104x128xf32>
    %26 = math.exp %25 : vector<104x128xf32>
    %cst_18 = arith.constant dense<0.000000e+00> : vector<104xf32>
    %27 = vector.multi_reduction <add>, %26, %cst_18 [1] : vector<104x128xf32> to vector<104xf32>
    %28 = vector.shape_cast %27 : vector<104xf32> to vector<104x1xf32>
    %cst_19 = arith.constant 1.000000e+00 : f32
    %29 = vector.broadcast %cst_19 : f32 to vector<104x1xf32>
    %30 = arith.divf %29, %28 : vector<104x1xf32>
    %31 = vector.broadcast %30 : vector<104x1xf32> to vector<104x128xf32>
    %32 = arith.mulf %26, %31 : vector<104x128xf32>
    %c0_20 = arith.constant 0 : index
    %c0_21 = arith.constant 0 : index
    %33 = vector.load %arg8[%c0_20, %c0_21] : memref<104x128xf32, #tpu.memory_space<vmem>>, vector<104x128xf32>
    tpu.vector_store %arg8[%c0_20, %c0_21], %32 {strides = array<i32>} : memref<104x128xf32, #tpu.memory_space<vmem>>, vector<104x128xf32>,
    return
  }
  func.func @transform_0(%arg0: i32) -> (i32, i32) {
    %c0_i32 = arith.constant 0 : i32
    %c0_i32_0 = arith.constant 0 : i32
    return %arg0, %c0_i32 : i32, i32
  }
  func.func @transform_1(%arg0: i32) -> (i32, i32) {
    %c0_i32 = arith.constant 0 : i32
    %c0_i32_0 = arith.constant 0 : i32
    %c0_i32_1 = arith.constant 0 : i32
    return %c0_i32, %c0_i32_0 : i32, i32
  }
  func.func @transform_2(%arg0: i32) -> (i32, i32) {
    %c0_i32 = arith.constant 0 : i32
    %c0_i32_0 = arith.constant 0 : i32
    %c0_i32_1 = arith.constant 0 : i32
    return %c0_i32, %c0_i32_0 : i32, i32
  }
  func.func @transform_3(%arg0: i32) -> (i32, i32) {
    %c0_i32 = arith.constant 0 : i32
    %c0_i32_0 = arith.constant 0 : i32
    %c0_i32_1 = arith.constant 0 : i32
    return %c0_i32, %c0_i32_0 : i32, i32
  }
  func.func @transform_4(%arg0: i32) -> (i32, i32) {
    %c0_i32 = arith.constant 0 : i32
    %c0_i32_0 = arith.constant 0 : i32
    %c0_i32_1 = arith.constant 0 : i32
    return %c0_i32, %c0_i32_0 : i32, i32
  }
  func.func @transform_5(%arg0: i32) -> (i32, i32) {
    %c0_i32 = arith.constant 0 : i32
    %c0_i32_0 = arith.constant 0 : i32
    %c0_i32_1 = arith.constant 0 : i32
    return %c0_i32, %c0_i32_0 : i32, i32
  }
  func.func @transform_6(%arg0: i32) -> (i32, i32) {
    %c0_i32 = arith.constant 0 : i32
    %c0_i32_0 = arith.constant 0 : i32
    %c0_i32_1 = arith.constant 0 : i32
    return %c0_i32, %c0_i32_0 : i32, i32
  }
  func.func @transform_7(%arg0: i32) -> (i32, i32) {
    %c0_i32 = arith.constant 0 : i32
    %c0_i32_0 = arith.constant 0 : i32
    return %arg0, %c0_i32 : i32, i32
  }
}

</mosaic_0001>

<bundles_post_ra>
// kernel: actor_forward.1
= control target key start
LH: loop header
LB: loop body
LE: loop exit
PB: predicated region body
PF: predicated region fallthrough
CT: control target
= control target key end

     0   :  { %s1603_s24 = smov 0   ;;  %s2029_s0 = inlined_call_operand.vmem [shape: f32[208,8], index: 0, kind: input, shape index: {}]   ;;  %s2030_s1 = inlined_call_operand.vmem [shape: f32[8,256], index: 1, kind: input, shape index: {}]   ;;  %s2031_s2 = inlined_call_operand.vmem [shape: f32[1,256], index: 2, kind: input, shape index: {}]   ;;  %s2032_s3 = inlined_call_operand.vmem [shape: bf16[256,256], index: 3, kind: input, shape index: {}]   ;;  %s2033_s4 = inlined_call_operand.vmem [shape: f32[1,256], index: 4, kind: input, shape index: {}]   ;;  %s2034_s5 = inlined_call_operand.vmem [shape: bf16[256,128], index: 5, kind: input, shape index: {}]   ;;  %s2035_s6 = inlined_call_operand.vmem [shape: f32[1,128], index: 6, kind: input, shape index: {}]   ;;  %s2036_s7 = inlined_call_operand.vmem [shape: f32[208,128], index: 7, kind: output, shape index: {}]  }
   0x1 LB: > { %s1300_s25 = sadd.s32 4294967295, %s1560_s24   ;;  %p1304_p0 = scmp.ge.s32.totalorder %s1560_s24, 1  ;;  %s1560_s24 = sphi %s1603_s24, %s17_s24  }
   0x2   : > { %p238_p1 = scmp.lt.s32.totalorder %s1560_s24, 3 }
   0x4   : > { %p239_p2 = pnand %p1304_p0, %p238_p1 }
   0x5   : > { %v297_v0 = vld [vmem:[%s2030_s1 + $0x8] sm:$0xff] (!%p239_p2)  ;;  %v296_v1 = vld [vmem:[%s2030_s1] sm:$0xff] (!%p239_p2)  ;;  %s270_s30 = smul.u32 (!%p239_p2), 13, %s1300_s25  ;;  %v1562_v2 = vmov (!%p239_p2), 0.0   ;;  %v1441_v5 = vld [vmem:[%s2032_s3 + $0x14] ss:$8 sps:$4 sm:$0xff] (!%p239_p2)   ;;  %v300_v62 = vlaneseq (!%p239_p2) }
   0x6   : > { %242 = sbr.rel (%p239_p2) target bundleno = 1041 (0x411), region = 48  ;;  %350 = vmatprep.subr.mxu0 (!%p239_p2), %v297_v0  ;;  %414 = vmatprep.mubr.f32.mxu0 (!%p239_p2), %v1562_v2  ;;  %v1438_v3 = vld [vmem:[%s2032_s3 + $0x4] ss:$8 sps:$4 sm:$0xff] (!%p239_p2)   ;;  %v1440_v4 = vld [vmem:[%s2032_s3] ss:$8 sps:$4 sm:$0xff] (!%p239_p2)   ;;  %vm310_vm0 = vcmask (!%p239_p2), 64512  }
   0x7   : > { %351 = vmatpush1.msra.mxu0 (!%p239_p2), %v296_v1  ;;  %p271_p3 = scmp.lt.s32.totalorder (!%p239_p2), %s270_s30, 25  ;;  %737 = vmatprep.subr.bf16.mxu1 (!%p239_p2), %v1438_v3  ;;  %v1443_v6 = vld [vmem:[%s2032_s3 + $0x10] ss:$8 sps:$4 sm:$0xff] (!%p239_p2)   ;;  %v1444_v7 = vld [vmem:[%s2032_s3 + $0x24] ss:$8 sps:$4 sm:$0xff] (!%p239_p2)   ;;  %v1804_v63 = vshrl.u32 (!%p239_p2), %v300_v62, 7 }
   0x8   : > { %738 = vmatpush1.bf16.msra.mxu1 (!%p239_p2), %v1440_v4  ;;  %v1446_v9 = vld [vmem:[%s2032_s3 + $0x20] ss:$8 sps:$4 sm:$0xff] (!%p239_p2)   ;;  %v1447_v10 = vld [vmem:[%s2032_s3 + $0x34] ss:$8 sps:$4 sm:$0xff] (!%p239_p2)   ;;  %v1449_v12 = vld [vmem:[%s2032_s3 + $0x30] ss:$8 sps:$4 sm:$0xff] (!%p239_p2)  }
   0x9   : > { %739 = vmatprep.subr.bf16.mxu1 (!%p239_p2), %v1441_v5  ;;  %v1450_v13 = vld [vmem:[%s2032_s3 + $0x44] ss:$8 sps:$4 sm:$0xff] (!%p239_p2)   ;;  %v1452_v15 = vld [vmem:[%s2032_s3 + $0x40] ss:$8 sps:$4 sm:$0xff] (!%p239_p2)   ;;  %v1453_v16 = vld [vmem:[%s2032_s3 + $0x54] ss:$8 sps:$4 sm:$0xff] (!%p239_p2)  }
   0xa   : > { %v1455_v18 = vld [vmem:[%s2032_s3 + $0x50] ss:$8 sps:$4 sm:$0xff] (!%p239_p2)   ;;  %v1456_v19 = vld [vmem:[%s2032_s3 + $0x64] ss:$8 sps:$4 sm:$0xff] (!%p239_p2)   ;;  %v1458_v21 = vld [vmem:[%s2032_s3 + $0x60] ss:$8 sps:$4 sm:$0xff] (!%p239_p2)  }
   0xb   : > { %v1459_v22 = vld [vmem:[%s2032_s3 + $0x74] ss:$8 sps:$4 sm:$0xff] (!%p239_p2)   ;;  %v1461_v24 = vld [vmem:[%s2032_s3 + $0x70] ss:$8 sps:$4 sm:$0xff] (!%p239_p2)   ;;  %v1462_v25 = vld [vmem:[%s2032_s3 + $0x84] ss:$8 sps:$4 sm:$0xff] (!%p239_p2)  }
   0xc   : > { %740 = vmatpush1.bf16.msra.mxu1 (!%p239_p2), %v1443_v6  ;;  %v1464_v27 = vld [vmem:[%s2032_s3 + $0x80] ss:$8 sps:$4 sm:$0xff] (!%p239_p2)   ;;  %v1465_v28 = vld [vmem:[%s2032_s3 + $0x94] ss:$8 sps:$4 sm:$0xff] (!%p239_p2)   ;;  %v1467_v30 = vld [vmem:[%s2032_s3 + $0x90] ss:$8 sps:$4 sm:$0xff] (!%p239_p2)  }
   0xd   : > { %s2038_s30 = smov (!%p271_p3, %s270_s30), 25  ;;  %741 = vmatprep.subr.bf16.mxu1 %v1444_v7  ;;  %v1468_v31 = vld [vmem:[%s2032_s3 + $0xa4] ss:$8 sps:$4 sm:$0xff]   ;;  %v1470_v33 = vld [vmem:[%s2032_s3 + $0xa0] ss:$8 sps:$4 sm:$0xff]   ;;  %v1490_v52 = vld [vmem:[%s2034_s5 + $0x50] sm:$0xff]  }
   0xe   : > { %s1305_s18 = sshll.u32 %s2038_s30, 3  ;;  %v1471_v34 = vld [vmem:[%s2032_s3 + $0xb4] ss:$8 sps:$4 sm:$0xff]   ;;  %v1473_v36 = vld [vmem:[%s2032_s3 + $0xb0] ss:$8 sps:$4 sm:$0xff]   ;;  %v1486_v48 = vld [vmem:[%s2034_s5 + $0x40] sm:$0xff]  }
   0xf   : > { %s1641_s21 = scalar_lea.vmem %s2029_s0, %s1305_s18  ;;  %v1474_v37 = vld [vmem:[%s2032_s3 + $0xc4] ss:$8 sps:$4 sm:$0xff]   ;;  %v1476_v39 = vld [vmem:[%s2032_s3 + $0xc0] ss:$8 sps:$4 sm:$0xff]   ;;  %v1477_v42 = vld [vmem:[%s2032_s3 + $0xd4] ss:$8 sps:$4 sm:$0xff]   ;;  %1371 = vmatprep.subr.bf16.mxu0 %v1486_v48  ;;  %s1998_s16 = scalar_lea.vmem %s2036_s7, %s1305_s18 }
  0x10   : > { %v283_v8 = vld [vmem:[%s1641_s21] sm:$0xff]  ;;  %v284_v11 = vld [vmem:[%s1641_s21 + $0x8] sm:$0xff]  ;;  %742 = vmatpush1.bf16.msra.mxu1 %v1446_v9  ;;  %v285_v14 = vld [vmem:[%s1641_s21 + $0x10] sm:$0xff]  ;;  %v302_v0 = vsub.s32 0, %v1804_v63 }
  0x11   : > { %1307 = vmatmul.mubr.msk.f32.vlgmr.msra.gmra.mrb[0].mxu0 %vm310_vm0, %v283_v8  ;;  %743 = vmatprep.subr.bf16.mxu1 %v1447_v10  ;;  %v286_v17 = vld [vmem:[%s1641_s21 + $0x18] sm:$0xff]  ;;  %v287_v20 = vld [vmem:[%s1641_s21 + $0x20] sm:$0xff]  ;;  %v288_v23 = vld [vmem:[%s1641_s21 + $0x28] sm:$0xff] }
  0x12   : > { %420 = vmatprep.mubr.f32.mxu0 %v1562_v2  ;;  %v289_v26 = vld [vmem:[%s1641_s21 + $0x30] sm:$0xff]  ;;  %v290_v29 = vld [vmem:[%s1641_s21 + $0x38] sm:$0xff]  ;;  %v291_v32 = vld [vmem:[%s1641_s21 + $0x40] sm:$0xff] }
  0x13   : > { %v292_v35 = vld [vmem:[%s1641_s21 + $0x48] sm:$0xff]  ;;  %v293_v38 = vld [vmem:[%s1641_s21 + $0x50] sm:$0xff]  ;;  %v294_v40 = vld [vmem:[%s1641_s21 + $0x58] sm:$0xff] }
  0x14   : > { %744 = vmatpush1.bf16.msra.mxu1 %v1449_v12  ;;  %v295_v41 = vld [vmem:[%s1641_s21 + $0x60] sm:$0xff]  ;;  %v1479_v43 = vld [vmem:[%s2032_s3 + $0xd0] ss:$8 sps:$4 sm:$0xff]   ;;  %v1483_v46 = vld [vmem:[%s2032_s3 + $0xf4] ss:$8 sps:$4 sm:$0xff]  }
  0x15   : > { %1308 = vmatmul.mubr.msk.f32.gmra.mrb[2].mxu0 %vm310_vm0, %v284_v11  ;;  %745 = vmatprep.subr.bf16.mxu1 %v1450_v13  ;;  %v1480_v44 = vld [vmem:[%s2032_s3 + $0xe4] ss:$8 sps:$4 sm:$0xff]   ;;  %v1482_v45 = vld [vmem:[%s2032_s3 + $0xe0] ss:$8 sps:$4 sm:$0xff]   ;;  %v1485_v47 = vld [vmem:[%s2032_s3 + $0xf0] ss:$8 sps:$4 sm:$0xff]  }
  0x16   : > { %426 = vmatprep.mubr.f32.mxu0 %v1562_v2  ;;  %v1487_v49 = vld [vmem:[%s2034_s5] sm:$0xff]   ;;  %v1488_v50 = vld [vmem:[%s2034_s5 + $0x48] sm:$0xff]   ;;  %v1491_v53 = vld [vmem:[%s2034_s5 + $0x10] sm:$0xff]  }
  0x17   : > { %1372 = vmatpush3.bf16.msra.mxu0 %v1487_v49  ;;  %v1489_v51 = vld [vmem:[%s2034_s5 + $0x8] sm:$0xff]   ;;  %v1492_v54 = vld [vmem:[%s2034_s5 + $0x58] sm:$0xff]   ;;  %v1494_v56 = vld [vmem:[%s2034_s5 + $0x60] sm:$0xff]  }
  0x18   : > { %746 = vmatpush1.bf16.msra.mxu1 %v1452_v15  ;;  %1373 = vmatprep.subr.bf16.mxu0 %v1488_v50  ;;  %v1493_v55 = vld [vmem:[%s2034_s5 + $0x18] sm:$0xff]   ;;  %v1495_v57 = vld [vmem:[%s2034_s5 + $0x20] sm:$0xff]   ;;  %v1496_v58 = vld [vmem:[%s2034_s5 + $0x68] sm:$0xff]  }
  0x19   : > { %1309 = vmatmul.mubr.msk.f32.gmra.mrb[4].mxu0 %vm310_vm0, %v285_v14  ;;  %747 = vmatprep.subr.bf16.mxu1 %v1453_v16  ;;  %v1497_v59 = vld [vmem:[%s2034_s5 + $0x28] sm:$0xff]   ;;  %v1498_v60 = vld [vmem:[%s2034_s5 + $0x70] sm:$0xff]   ;;  %v298_v1 = vld [vmem:[%s2031_s2] sm:$0x3] }
  0x1a   : > { %432 = vmatprep.mubr.f32.mxu0 %v1562_v2  ;;  %v1499_v61 = vld [vmem:[%s2034_s5 + $0x30] sm:$0xff]   ;;  %v1813_v3 = vrot.slane %v298_v1, %v302_v0 }
  0x1b   : > { %1374 = vmatpush3.bf16.msra.mxu0 %v1489_v51 }
  0x1c   : > { %748 = vmatpush1.bf16.msra.mxu1 %v1455_v18  ;;  %1375 = vmatprep.subr.bf16.mxu0 %v1490_v52 }
  0x1d   : > { %1310 = vmatmul.mubr.msk.f32.gmra.mrb[6].mxu0 %vm310_vm0, %v286_v17  ;;  %749 = vmatprep.subr.bf16.mxu1 %v1456_v19 }
  0x1e   : > { %438 = vmatprep.mubr.f32.mxu0 %v1562_v2 }
  0x1f   : > { %1376 = vmatpush3.bf16.msra.mxu0 %v1491_v53 }
  0x20   : > { %750 = vmatpush1.bf16.msra.mxu1 %v1458_v21  ;;  %1377 = vmatprep.subr.bf16.mxu0 %v1492_v54 }
  0x21   : > { %1311 = vmatmul.mubr.msk.f32.gmra.mrb[8].mxu0 %vm310_vm0, %v287_v20  ;;  %751 = vmatprep.subr.bf16.mxu1 %v1459_v22 }
  0x22   : > { %444 = vmatprep.mubr.f32.mxu0 %v1562_v2 }
  0x23   : > { %1378 = vmatpush3.bf16.msra.mxu0 %v1493_v55 }
  0x24   : > { %752 = vmatpush1.bf16.msra.mxu1 %v1461_v24  ;;  %1379 = vmatprep.subr.bf16.mxu0 %v1494_v56 }
  0x25   : > { %1312 = vmatmul.mubr.msk.f32.gmra.mrb[10].mxu0 %vm310_vm0, %v288_v23  ;;  %753 = vmatprep.subr.bf16.mxu1 %v1462_v25 }
  0x26   : > { %450 = vmatprep.mubr.f32.mxu0 %v1562_v2 }
  0x27   : > { %1380 = vmatpush3.bf16.msra.mxu0 %v1495_v57 }
  0x28   : > { %754 = vmatpush1.bf16.msra.mxu1 %v1464_v27  ;;  %1381 = vmatprep.subr.bf16.mxu0 %v1496_v58 }
  0x29   : > { %1313 = vmatmul.mubr.msk.f32.gmra.mrb[12].mxu0 %vm310_vm0, %v289_v26  ;;  %755 = vmatprep.subr.bf16.mxu1 %v1465_v28 }
  0x2a   : > { %456 = vmatprep.mubr.f32.mxu0 %v1562_v2 }
  0x2b   : > { %1382 = vmatpush3.bf16.msra.mxu0 %v1497_v59 }
  0x2c   : > { %756 = vmatpush1.bf16.msra.mxu1 %v1467_v30  ;;  %1383 = vmatprep.subr.bf16.mxu0 %v1498_v60 }
  0x2d   : > { %1314 = vmatmul.mubr.msk.f32.gmra.mrb[14].mxu0 %vm310_vm0, %v290_v29  ;;  %757 = vmatprep.subr.bf16.mxu1 %v1468_v31 }
  0x2e   : > { %462 = vmatprep.mubr.f32.mxu0 %v1562_v2 }
  0x2f   : > { %1384 = vmatpush3.bf16.msra.mxu0 %v1499_v61 }
  0x30   : > { %758 = vmatpush1.bf16.msra.mxu1 %v1470_v33 }
  0x31   : > { %1315 = vmatmul.mubr.msk.f32.gmra.mrb[16].mxu0 %vm310_vm0, %v291_v32  ;;  %759 = vmatprep.subr.bf16.mxu1 %v1471_v34 }
  0x32   : > { %468 = vmatprep.mubr.f32.mxu0 %v1562_v2 }
  0x34   : > { %760 = vmatpush1.bf16.msra.mxu1 %v1473_v36 }
  0x35   : > { %1316 = vmatmul.mubr.msk.f32.gmra.mrb[18].mxu0 %vm310_vm0, %v292_v35  ;;  %761 = vmatprep.subr.bf16.mxu1 %v1474_v37 }
  0x36   : > { %474 = vmatprep.mubr.f32.mxu0 %v1562_v2 }
  0x38   : > { %762 = vmatpush1.bf16.msra.mxu1 %v1476_v39 }
  0x39   : > { %1317 = vmatmul.mubr.msk.f32.gmra.mrb[20].mxu0 %vm310_vm0, %v293_v38  ;;  %763 = vmatprep.subr.bf16.mxu1 %v1477_v42 }
  0x3a   : > { %480 = vmatprep.mubr.f32.mxu0 %v1562_v2 }
  0x3c   : > { %764 = vmatpush1.bf16.msra.mxu1 %v1479_v43 }
  0x3d   : > { %1318 = vmatmul.mubr.msk.f32.gmra.mrb[22].mxu0 %vm310_vm0, %v294_v40  ;;  %765 = vmatprep.subr.bf16.mxu1 %v1480_v44 }
  0x3e   : > { %486 = vmatprep.mubr.f32.mxu0 %v1562_v2  ;;  %v306_v2 = vsub.s32 1, %v1804_v63 }
  0x40   : > { %766 = vmatpush1.bf16.msra.mxu1 %v1482_v45  ;;  %v1817_v5 = vrot.slane %v298_v1, %v306_v2 }
  0x41   : > { %1319 = vmatmul.mubr.msk.f32.gmra.mrb[24].mxu0 %vm310_vm0, %v295_v41  ;;  %767 = vmatprep.subr.bf16.mxu1 %v1483_v46 }
  0x44   : > { %768 = vmatpush1.bf16.msra.mxu1 %v1485_v47 }
  0xe4   : > { %v416_v4 = vpop.f32.mrb[0].mxu0 }
  0xe5   : > { %v418_v6 = vpop.f32.mrb[1].mxu0  ;;  %v417_v7 = vadd.f32 %v416_v4, %v1813_v3 }
  0xe6   : > { %v419_v8 = vadd.f32 %v418_v6, %v1817_v5 }
  0xe7   : > { %v493_v13 = vmax.f32 %v417_v7, 0.0 }
  0xe8   : > { %v422_v9 = vpop.f32.mrb[2].mxu0  ;;  %v494_v15 = vmax.f32 %v419_v8, 0.0 }
  0xe9   : > { %v423_v10 = vadd.f32 %v422_v9, %v1813_v3  ;;  %v424_v11 = vpop.f32.mrb[3].mxu0 }
  0xea   : > { %v425_v12 = vadd.f32 %v424_v11, %v1817_v5 }
  0xeb   : > { %v495_v14 = vmax.f32 %v423_v10, 0.0 }
  0xec   : > { %v496_v16 = vmax.f32 %v425_v12, 0.0  ;;  %v428_v17 = vpop.f32.mrb[4].mxu0 }
  0xed   : > { %v519_v18 = vpack.c.bf16 %v495_v14, %v493_v13  ;;  %v430_v19 = vpop.f32.mrb[5].mxu0  ;;  %v429_v21 = vadd.f32 %v428_v17, %v1813_v3 }
  0xee   : > { %v520_v20 = vpack.c.bf16 %v496_v16, %v494_v15  ;;  %v431_v22 = vadd.f32 %v430_v19, %v1817_v5 }
  0xef   : > { %v497_v27 = vmax.f32 %v429_v21, 0.0 }
  0xf0   : > { %v434_v23 = vpop.f32.mrb[6].mxu0  ;;  %769 = vmatprep.mubr.bf16.mxu1 %v520_v20  ;;  %v498_v29 = vmax.f32 %v431_v22, 0.0 }
  0xf1   : > { %v435_v24 = vadd.f32 %v434_v23, %v1813_v3  ;;  %v436_v25 = vpop.f32.mrb[7].mxu0  ;;  %770 = vmatmul.mubr.bf16.vlgmr.msra.gmra.mrb[0].mxu1 %v519_v18 }
  0xf2   : > { %v437_v26 = vadd.f32 %v436_v25, %v1817_v5 }
  0xf3   : > { %v499_v28 = vmax.f32 %v435_v24, 0.0 }
  0xf4   : > { %v500_v30 = vmax.f32 %v437_v26, 0.0  ;;  %v440_v31 = vpop.f32.mrb[8].mxu0 }
  0xf5   : > { %v521_v32 = vpack.c.bf16 %v499_v28, %v497_v27  ;;  %v442_v33 = vpop.f32.mrb[9].mxu0  ;;  %v441_v35 = vadd.f32 %v440_v31, %v1813_v3 }
  0xf6   : > { %v522_v34 = vpack.c.bf16 %v500_v30, %v498_v29  ;;  %v443_v36 = vadd.f32 %v442_v33, %v1817_v5 }
  0xf7   : > { %v501_v41 = vmax.f32 %v441_v35, 0.0 }
  0xf8   : > { %v446_v37 = vpop.f32.mrb[10].mxu0  ;;  %779 = vmatprep.mubr.bf16.mxu1 %v522_v34  ;;  %v502_v43 = vmax.f32 %v443_v36, 0.0 }
  0xf9   : > { %v447_v38 = vadd.f32 %v446_v37, %v1813_v3  ;;  %v448_v39 = vpop.f32.mrb[11].mxu0  ;;  %780 = vmatmul.mubr.bf16.gmra.mrb[4].mxu1 %v521_v32 }
  0xfa   : > { %v449_v40 = vadd.f32 %v448_v39, %v1817_v5 }
  0xfb   : > { %v503_v42 = vmax.f32 %v447_v38, 0.0  ;;  %v1500_v38 = vld [vmem:[%s2034_s5 + $0x78] sm:$0xff]  }
  0xfc   : > { %v504_v44 = vmax.f32 %v449_v40, 0.0  ;;  %v452_v45 = vpop.f32.mrb[12].mxu0  ;;  %1385 = vmatprep.subr.bf16.mxu0 %v1500_v38 }
  0xfd   : > { %v523_v46 = vpack.c.bf16 %v503_v42, %v501_v41  ;;  %v454_v47 = vpop.f32.mrb[13].mxu0  ;;  %v453_v49 = vadd.f32 %v452_v45, %v1813_v3 }
  0xfe   : > { %v524_v48 = vpack.c.bf16 %v504_v44, %v502_v43  ;;  %v455_v50 = vadd.f32 %v454_v47, %v1817_v5 }
  0xff   : > { %v505_v55 = vmax.f32 %v453_v49, 0.0 }
 0x100   : > { %v458_v51 = vpop.f32.mrb[14].mxu0  ;;  %789 = vmatprep.mubr.bf16.mxu1 %v524_v48  ;;  %v506_v57 = vmax.f32 %v455_v50, 0.0 }
 0x101   : > { %v459_v52 = vadd.f32 %v458_v51, %v1813_v3  ;;  %v460_v53 = vpop.f32.mrb[15].mxu0  ;;  %790 = vmatmul.mubr.bf16.gmra.mrb[8].mxu1 %v523_v46 }
 0x102   : > { %v461_v54 = vadd.f32 %v460_v53, %v1817_v5 }
 0x103   : > { %v507_v56 = vmax.f32 %v459_v52, 0.0 }
 0x104   : > { %v508_v58 = vmax.f32 %v461_v54, 0.0  ;;  %v464_v59 = vpop.f32.mrb[16].mxu0 }
 0x105   : > { %v525_v60 = vpack.c.bf16 %v507_v56, %v505_v55  ;;  %v466_v61 = vpop.f32.mrb[17].mxu0  ;;  %v465_v1 = vadd.f32 %v464_v59, %v1813_v3 }
 0x106   : > { %v526_v62 = vpack.c.bf16 %v508_v58, %v506_v57  ;;  %v467_v4 = vadd.f32 %v466_v61, %v1817_v5 }
 0x107   : > { %v509_v10 = vmax.f32 %v465_v1, 0.0 }
 0x108   : > { %v470_v6 = vpop.f32.mrb[18].mxu0  ;;  %799 = vmatprep.mubr.bf16.mxu1 %v526_v62  ;;  %v510_v12 = vmax.f32 %v467_v4, 0.0 }
 0x109   : > { %v471_v7 = vadd.f32 %v470_v6, %v1813_v3  ;;  %v472_v8 = vpop.f32.mrb[19].mxu0  ;;  %800 = vmatmul.mubr.bf16.gmra.mrb[12].mxu1 %v525_v60 }
 0x10a   : > { %v473_v9 = vadd.f32 %v472_v8, %v1817_v5 }
 0x10b   : > { %v511_v11 = vmax.f32 %v471_v7, 0.0 }
 0x10c   : > { %v512_v13 = vmax.f32 %v473_v9, 0.0  ;;  %v476_v14 = vpop.f32.mrb[20].mxu0 }
 0x10d   : > { %v527_v15 = vpack.c.bf16 %v511_v11, %v509_v10  ;;  %v478_v16 = vpop.f32.mrb[21].mxu0  ;;  %v477_v18 = vadd.f32 %v476_v14, %v1813_v3 }
 0x10e   : > { %v528_v17 = vpack.c.bf16 %v512_v13, %v510_v12  ;;  %v479_v19 = vadd.f32 %v478_v16, %v1817_v5 }
 0x10f   : > { %v513_v24 = vmax.f32 %v477_v18, 0.0 }
 0x110   : > { %v482_v20 = vpop.f32.mrb[22].mxu0  ;;  %809 = vmatprep.mubr.bf16.mxu1 %v528_v17  ;;  %v514_v26 = vmax.f32 %v479_v19, 0.0 }
 0x111   : > { %v483_v21 = vadd.f32 %v482_v20, %v1813_v3  ;;  %v484_v22 = vpop.f32.mrb[23].mxu0  ;;  %810 = vmatmul.mubr.bf16.gmra.mrb[16].mxu1 %v527_v15 }
 0x112   : > { %v485_v23 = vadd.f32 %v484_v22, %v1817_v5 }
 0x113   : > { %v515_v25 = vmax.f32 %v483_v21, 0.0 }
 0x114   : > { %v516_v27 = vmax.f32 %v485_v23, 0.0  ;;  %v488_v28 = vpop.f32.mrb[24].mxu0 }
 0x115   : > { %v529_v29 = vpack.c.bf16 %v515_v25, %v513_v24  ;;  %v489_v30 = vadd.f32 %v488_v28, %v1813_v3  ;;  %v490_v31 = vpop.f32.mrb[25].mxu0  ;;  %v1501_v3 = vld [vmem:[%s2034_s5 + $0x38] sm:$0xff]  }
 0x116   : > { %v530_v32 = vpack.c.bf16 %v516_v27, %v514_v26  ;;  %v491_v33 = vadd.f32 %v490_v31, %v1817_v5  ;;  %1386 = vmatpush3.bf16.msra.mxu0 %v1501_v3  ;;  %v565_v5 = vld [vmem:[%s2033_s4] sm:$0x3] }
 0x117   : > { %v517_v35 = vmax.f32 %v489_v30, 0.0  ;;  %v1856_v39 = vrot.slane %v565_v5, %v302_v0  ;;  %v1860_v40 = vrot.slane %v565_v5, %v306_v2 }
 0x118   : > { %819 = vmatprep.mubr.bf16.mxu1 %v530_v32  ;;  %v518_v34 = vmax.f32 %v491_v33, 0.0 }
 0x119   : > { %820 = vmatmul.mubr.bf16.gmra.mrb[20].mxu1 %v529_v29  ;;  %v531_v37 = vpack.c.bf16 %v517_v35, %v517_v35 }
 0x11a   : > { %v532_v36 = vpack.c.bf16 %v518_v34, %v518_v34 }
 0x11c   : > { %829 = vmatprep.mubr.bf16.mxu1 %v532_v36 }
 0x121   : > { %830 = vmatmul.mubr.bf16.gmra.mrb[24].mxu1 %v531_v37 }
 0x1c4   : > { %v771_v41 = vpop.f32.mrb[0].mxu1 }
 0x1c5   : > { %v772_v42 = vadd.f32 %v771_v41, %v1856_v39  ;;  %v773_v43 = vpop.f32.mrb[1].mxu1 }
 0x1c6   : > { %v774_v44 = vadd.f32 %v773_v43, %v1860_v40  ;;  %v775_v45 = vpop.f32.mrb[2].mxu1 }
 0x1c7   : > { %v776_v46 = vadd.f32 %v775_v45, %v1856_v39  ;;  %v777_v47 = vpop.f32.mrb[3].mxu1  ;;  %v838_v49 = vmax.f32 %v772_v42, 0.0 }
 0x1c8   : > { %v778_v48 = vadd.f32 %v777_v47, %v1860_v40  ;;  %v839_v0 = vmax.f32 %v774_v44, 0.0 }
 0x1c9   : > { %v840_v50 = vmax.f32 %v776_v46, 0.0 }
 0x1ca   : > { %v841_v51 = vmax.f32 %v778_v48, 0.0 }
 0x1cb   : > { %v864_v52 = vpack.c.bf16 %v840_v50, %v838_v49 }
 0x1cc   : > { %v865_v63 = vpack.c.bf16 %v841_v51, %v839_v0  ;;  %v781_v2 = vpop.f32.mrb[4].mxu1 }
 0x1cd   : > { %v782_v53 = vadd.f32 %v781_v2, %v1856_v39  ;;  %v783_v54 = vpop.f32.mrb[5].mxu1 }
 0x1ce   : > { %v784_v55 = vadd.f32 %v783_v54, %v1860_v40  ;;  %v785_v56 = vpop.f32.mrb[6].mxu1  ;;  %1045 = vmatprep.mubr.bf16.mxu0 %v865_v63 }
 0x1cf   : > { %v786_v57 = vadd.f32 %v785_v56, %v1856_v39  ;;  %v787_v58 = vpop.f32.mrb[7].mxu1  ;;  %1046 = vmatmul.mubr.bf16.vlgmr.msra.gmra.mrb[28].mxu0 %v864_v52  ;;  %v842_v60 = vmax.f32 %v782_v53, 0.0 }
 0x1d0   : > { %v788_v59 = vadd.f32 %v787_v58, %v1860_v40  ;;  %v843_v62 = vmax.f32 %v784_v55, 0.0 }
 0x1d1   : > { %v844_v61 = vmax.f32 %v786_v57, 0.0 }
 0x1d2   : > { %v845_v1 = vmax.f32 %v788_v59, 0.0 }
 0x1d3   : > { %v866_v4 = vpack.c.bf16 %v844_v61, %v842_v60 }
 0x1d4   : > { %v867_v6 = vpack.c.bf16 %v845_v1, %v843_v62  ;;  %v791_v7 = vpop.f32.mrb[8].mxu1 }
 0x1d5   : > { %v792_v8 = vadd.f32 %v791_v7, %v1856_v39  ;;  %v793_v9 = vpop.f32.mrb[9].mxu1 }
 0x1d6   : > { %v794_v10 = vadd.f32 %v793_v9, %v1860_v40  ;;  %v795_v11 = vpop.f32.mrb[10].mxu1  ;;  %1053 = vmatprep.mubr.bf16.mxu0 %v867_v6 }
 0x1d7   : > { %v796_v12 = vadd.f32 %v795_v11, %v1856_v39  ;;  %v797_v13 = vpop.f32.mrb[11].mxu1  ;;  %1054 = vmatmul.mubr.bf16.gmra.mrb[32].mxu0 %v866_v4  ;;  %v846_v15 = vmax.f32 %v792_v8, 0.0 }
 0x1d8   : > { %v798_v14 = vadd.f32 %v797_v13, %v1860_v40  ;;  %v847_v17 = vmax.f32 %v794_v10, 0.0  ;;  %v1891_v13 = vld [vmem:[%s2035_s6] ss:$0 sm:$0xff] }
 0x1d9   : > { %v848_v16 = vmax.f32 %v796_v12, 0.0 }
 0x1da   : > { %v849_v18 = vmax.f32 %v798_v14, 0.0 }
 0x1db   : > { %v868_v19 = vpack.c.bf16 %v848_v16, %v846_v15 }
 0x1dc   : > { %v869_v20 = vpack.c.bf16 %v849_v18, %v847_v17  ;;  %v801_v21 = vpop.f32.mrb[12].mxu1 }
 0x1dd   : > { %v802_v22 = vadd.f32 %v801_v21, %v1856_v39  ;;  %v803_v23 = vpop.f32.mrb[13].mxu1 }
 0x1de   : > { %v804_v24 = vadd.f32 %v803_v23, %v1860_v40  ;;  %v805_v25 = vpop.f32.mrb[14].mxu1  ;;  %1061 = vmatprep.mubr.bf16.mxu0 %v869_v20 }
 0x1df   : > { %v806_v26 = vadd.f32 %v805_v25, %v1856_v39  ;;  %v807_v27 = vpop.f32.mrb[15].mxu1  ;;  %1062 = vmatmul.mubr.bf16.gmra.mrb[36].mxu0 %v868_v19  ;;  %v850_v29 = vmax.f32 %v802_v22, 0.0 }
 0x1e0   : > { %v808_v28 = vadd.f32 %v807_v27, %v1860_v40  ;;  %v851_v31 = vmax.f32 %v804_v24, 0.0 }
 0x1e1   : > { %v852_v30 = vmax.f32 %v806_v26, 0.0 }
 0x1e2   : > { %v853_v32 = vmax.f32 %v808_v28, 0.0 }
 0x1e3   : > { %v870_v33 = vpack.c.bf16 %v852_v30, %v850_v29 }
 0x1e4   : > { %v871_v34 = vpack.c.bf16 %v853_v32, %v851_v31  ;;  %v811_v35 = vpop.f32.mrb[16].mxu1 }
 0x1e5   : > { %v812_v36 = vadd.f32 %v811_v35, %v1856_v39  ;;  %v813_v37 = vpop.f32.mrb[17].mxu1 }
 0x1e6   : > { %v814_v38 = vadd.f32 %v813_v37, %v1860_v40  ;;  %v815_v3 = vpop.f32.mrb[18].mxu1  ;;  %1069 = vmatprep.mubr.bf16.mxu0 %v871_v34 }
 0x1e7   : > { %v816_v5 = vadd.f32 %v815_v3, %v1856_v39  ;;  %v817_v41 = vpop.f32.mrb[19].mxu1  ;;  %1070 = vmatmul.mubr.bf16.gmra.mrb[40].mxu0 %v870_v33  ;;  %v854_v43 = vmax.f32 %v812_v36, 0.0 }
 0x1e8   : > { %v818_v42 = vadd.f32 %v817_v41, %v1860_v40  ;;  %v855_v45 = vmax.f32 %v814_v38, 0.0 }
 0x1e9   : > { %v856_v44 = vmax.f32 %v816_v5, 0.0 }
 0x1ea   : > { %v857_v46 = vmax.f32 %v818_v42, 0.0 }
 0x1eb   : > { %v872_v47 = vpack.c.bf16 %v856_v44, %v854_v43 }
 0x1ec   : > { %v873_v48 = vpack.c.bf16 %v857_v46, %v855_v45  ;;  %v821_v49 = vpop.f32.mrb[20].mxu1 }
 0x1ed   : > { %v822_v50 = vadd.f32 %v821_v49, %v1856_v39  ;;  %v823_v0 = vpop.f32.mrb[21].mxu1 }
 0x1ee   : > { %v824_v51 = vadd.f32 %v823_v0, %v1860_v40  ;;  %v825_v52 = vpop.f32.mrb[22].mxu1  ;;  %1077 = vmatprep.mubr.bf16.mxu0 %v873_v48 }
 0x1ef   : > { %v826_v63 = vadd.f32 %v825_v52, %v1856_v39  ;;  %v827_v2 = vpop.f32.mrb[23].mxu1  ;;  %1078 = vmatmul.mubr.bf16.gmra.mrb[44].mxu0 %v872_v47  ;;  %v858_v54 = vmax.f32 %v822_v50, 0.0 }
 0x1f0   : > { %v828_v53 = vadd.f32 %v827_v2, %v1860_v40  ;;  %v859_v56 = vmax.f32 %v824_v51, 0.0 }
 0x1f1   : > { %v860_v55 = vmax.f32 %v826_v63, 0.0 }
 0x1f2   : > { %v861_v57 = vmax.f32 %v828_v53, 0.0 }
 0x1f3   : > { %v874_v58 = vpack.c.bf16 %v860_v55, %v858_v54 }
 0x1f4   : > { %v875_v59 = vpack.c.bf16 %v861_v57, %v859_v56  ;;  %v831_v60 = vpop.f32.mrb[24].mxu1 }
 0x1f5   : > { %v832_v61 = vadd.f32 %v831_v60, %v1856_v39  ;;  %v833_v62 = vpop.f32.mrb[25].mxu1 }
 0x1f6   : > { %v834_v1 = vadd.f32 %v833_v62, %v1860_v40  ;;  %v835_v4 = vpop.f32.mrb[26].mxu1  ;;  %1085 = vmatprep.mubr.bf16.mxu0 %v875_v59 }
 0x1f7   : > { %v836_v6 = vpop.f32.mrb[27].mxu1  ;;  %1086 = vmatmul.mubr.bf16.gmra.mrb[48].mxu0 %v874_v58  ;;  %v862_v8 = vmax.f32 %v832_v61, 0.0 }
 0x1f8   : > { %v863_v7 = vmax.f32 %v834_v1, 0.0 }
 0x1f9   : > { %v876_v10 = vpack.c.bf16 %v862_v8, %v862_v8 }
 0x1fa   : > { %v877_v9 = vpack.c.bf16 %v863_v7, %v863_v7 }
 0x1fc   : > { %1093 = vmatprep.mubr.bf16.mxu0 %v877_v9 }
 0x1ff   : > { %1094 = vmatmul.mubr.bf16.gmra.mrb[52].mxu0 %v876_v10 }
 0x2a2   : > { %v1387_v11 = vpop.f32.mrb[28].mxu0 }
 0x2a3   : > { %v1388_v12 = vpop.f32.mrb[29].mxu0 }
 0x2a4   : > { %v1389_v39 = vadd.f32 %v1388_v12, %v1387_v11  ;;  %v1390_v14 = vpop.f32.mrb[30].mxu0 }
 0x2a5   : > { %v1391_v40 = vpop.f32.mrb[31].mxu0 }
 0x2a6   : > { %v1392_v15 = vadd.f32 %v1391_v40, %v1390_v14  ;;  %v1894_v16 = vadd.f32 %v1389_v39, %v1891_v13 }
 0x2a8   : > { %1101 = vmax.xlane.f32.xlu0 %v1894_v16  ;;  %v1898_v18 = vadd.f32 %v1392_v15, %v1891_v13 }
 0x2aa   : > { %v1393_v17 = vpop.f32.mrb[32].mxu0 }
 0x2ab   : > { %v1394_v19 = vpop.f32.mrb[33].mxu0 }
 0x2ac   : > { %v1395_v20 = vadd.f32 %v1394_v19, %v1393_v17  ;;  %v1396_v21 = vpop.f32.mrb[34].mxu0  ;;  %1103 = vmax.xlane.f32.xlu0 %v1898_v18 }
 0x2ad   : > { %v1397_v22 = vpop.f32.mrb[35].mxu0 }
 0x2ae   : > { %v1398_v23 = vadd.f32 %v1397_v22, %v1396_v21  ;;  %v1056_v24 = vadd.f32 %v1395_v20, %v1891_v13 }
 0x2b0   : > { %1105 = vmax.xlane.f32.xlu1 %v1056_v24  ;;  %v1903_v26 = vadd.f32 %v1398_v23, %v1891_v13 }
 0x2b2   : > { %v1399_v25 = vpop.f32.mrb[36].mxu0 }
 0x2b3   : > { %v1400_v27 = vpop.f32.mrb[37].mxu0 }
 0x2b4   : > { %v1401_v28 = vadd.f32 %v1400_v27, %v1399_v25  ;;  %v1402_v29 = vpop.f32.mrb[38].mxu0  ;;  %1107 = vmax.xlane.f32.xlu1 %v1903_v26 }
 0x2b5   : > { %v1403_v30 = vpop.f32.mrb[39].mxu0 }
 0x2b6   : > { %v1404_v31 = vadd.f32 %v1403_v30, %v1402_v29  ;;  %v1907_v32 = vadd.f32 %v1401_v28, %v1891_v13 }
 0x2b8   : > { %1109 = vmax.xlane.f32.xlu0 %v1907_v32  ;;  %v1911_v33 = vadd.f32 %v1404_v31, %v1891_v13 }
 0x2ba   : > { %v1405_v34 = vpop.f32.mrb[40].mxu0  ;;  %1111 = vmax.xlane.f32.xlu1 %v1911_v33 }
 0x2bb   : > { %v1406_v35 = vpop.f32.mrb[41].mxu0 }
 0x2bc   : > { %v1407_v36 = vadd.f32 %v1406_v35, %v1405_v34  ;;  %v1408_v37 = vpop.f32.mrb[42].mxu0 }
 0x2bd   : > { %v1409_v38 = vpop.f32.mrb[43].mxu0 }
 0x2be   : > { %v1410_v3 = vadd.f32 %v1409_v38, %v1408_v37  ;;  %v1915_v5 = vadd.f32 %v1407_v36, %v1891_v13 }
 0x2c0   : > { %1113 = vmax.xlane.f32.xlu0 %v1915_v5  ;;  %v1919_v41 = vadd.f32 %v1410_v3, %v1891_v13 }
 0x2c2   : > { %v1411_v42 = vpop.f32.mrb[44].mxu0  ;;  %1115 = vmax.xlane.f32.xlu1 %v1919_v41 }
 0x2c3   : > { %v1412_v43 = vpop.f32.mrb[45].mxu0 }
 0x2c4   : > { %v1413_v44 = vadd.f32 %v1412_v43, %v1411_v42  ;;  %v1414_v45 = vpop.f32.mrb[46].mxu0 }
 0x2c5   : > { %v1415_v46 = vpop.f32.mrb[47].mxu0 }
 0x2c6   : > { %v1416_v47 = vadd.f32 %v1415_v46, %v1414_v45  ;;  %v1923_v48 = vadd.f32 %v1413_v44, %v1891_v13 }
 0x2c8   : > { %1117 = vmax.xlane.f32.xlu0 %v1923_v48  ;;  %v1927_v49 = vadd.f32 %v1416_v47, %v1891_v13 }
 0x2ca   : > { %v1417_v50 = vpop.f32.mrb[48].mxu0  ;;  %1119 = vmax.xlane.f32.xlu1 %v1927_v49 }
 0x2cb   : > { %v1418_v0 = vpop.f32.mrb[49].mxu0 }
 0x2cc   : > { %v1419_v51 = vadd.f32 %v1418_v0, %v1417_v50  ;;  %v1420_v52 = vpop.f32.mrb[50].mxu0 }
 0x2cd   : > { %v1421_v63 = vpop.f32.mrb[51].mxu0 }
 0x2ce   : > { %v1422_v2 = vadd.f32 %v1421_v63, %v1420_v52  ;;  %v1931_v53 = vadd.f32 %v1419_v51, %v1891_v13 }
 0x2d0   : > { %1121 = vmax.xlane.f32.xlu0 %v1931_v53  ;;  %v1935_v54 = vadd.f32 %v1422_v2, %v1891_v13 }
 0x2d2   : > { %v1423_v55 = vpop.f32.mrb[52].mxu0  ;;  %1123 = vmax.xlane.f32.xlu1 %v1935_v54 }
 0x2d3   : > { %v1424_v56 = vpop.f32.mrb[53].mxu0 }
 0x2d4   : > { %v1425_v57 = vadd.f32 %v1424_v56, %v1423_v55  ;;  %v1426_v58 = vpop.f32.mrb[54].mxu0 }
 0x2d5   : > { %v1427_v59 = vpop.f32.mrb[55].mxu0 }
 0x2d6   : > { %v1939_v60 = vadd.f32 %v1425_v57, %v1891_v13 }
 0x2d8   : > { %1125 = vmax.xlane.f32.xlu0 %v1939_v60 }
 0x335   : > { %v1102_v61 = vpop.xlane.xlu0 %1101 }
 0x336   : > { %v1127_v62 = vsub.f32 %v1894_v16, %v1102_v61 }
 0x338   : > { %v1140_v1 = vmul.f32 1.442695, %v1127_v62 }
 0x339   : > { %v1104_v4 = vpop.xlane.xlu0 %1103 }
 0x33a   : > { %1502 = vpow2.f32 %v1140_v1  ;;  %v1128_v6 = vsub.f32 %v1898_v18, %v1104_v4 }
 0x33c   : > { %v1142_v7 = vmul.f32 1.442695, %v1128_v6 }
 0x33d   : > { %v1106_v8 = vpop.xlane.xlu1 %1105 }
 0x33e   : > { %1504 = vpow2.f32 %v1142_v7  ;;  %v1129_v9 = vsub.f32 %v1056_v24, %v1106_v8 }
 0x340   : > { %v1144_v10 = vmul.f32 1.442695, %v1129_v9 }
 0x341   : > { %v1108_v11 = vpop.xlane.xlu1 %1107 }
 0x342   : > { %1506 = vpow2.f32 %v1144_v10  ;;  %v1130_v12 = vsub.f32 %v1903_v26, %v1108_v11 }
 0x344   : > { %v1945_v13 = vpop.eup %1502  ;;  %v1146_v39 = vmul.f32 1.442695, %v1130_v12 }
 0x345   : > { %1166 = vadd.xlane.f32.xlu1 %v1945_v13  ;;  %v1110_v14 = vpop.xlane.xlu0 %1109 }
 0x346   : > { %1508 = vpow2.f32 %v1146_v39  ;;  %v1131_v40 = vsub.f32 %v1907_v32, %v1110_v14 }
 0x347   : > { %v1112_v15 = vpop.xlane.xlu1 %1111 }
 0x348   : > { %v1949_v16 = vpop.eup %1504  ;;  %v1148_v17 = vmul.f32 1.442695, %v1131_v40  ;;  %v1132_v18 = vsub.f32 %v1911_v33, %v1112_v15 }
 0x349   : > { %1168 = vadd.xlane.f32.xlu0 %v1949_v16 }
 0x34a   : > { %1510 = vpow2.f32 %v1148_v17  ;;  %v1150_v19 = vmul.f32 1.442695, %v1132_v18 }
 0x34c   : > { %v1953_v20 = vpop.eup %1506  ;;  %1512 = vpow2.f32 %v1150_v19 }
 0x34d   : > { %1170 = vadd.xlane.f32.xlu1 %v1953_v20  ;;  %v1114_v21 = vpop.xlane.xlu0 %1113 }
 0x34e   : > { %v1133_v22 = vsub.f32 %v1915_v5, %v1114_v21 }
 0x34f   : > { %v1116_v23 = vpop.xlane.xlu1 %1115 }
 0x350   : > { %v1957_v24 = vpop.eup %1508  ;;  %v1152_v25 = vmul.f32 1.442695, %v1133_v22  ;;  %v1134_v26 = vsub.f32 %v1919_v41, %v1116_v23 }
 0x351   : > { %1172 = vadd.xlane.f32.xlu0 %v1957_v24 }
 0x352   : > { %1514 = vpow2.f32 %v1152_v25  ;;  %v1154_v27 = vmul.f32 1.442695, %v1134_v26 }
 0x354   : > { %v1961_v28 = vpop.eup %1510  ;;  %1516 = vpow2.f32 %v1154_v27 }
 0x355   : > { %1174 = vadd.xlane.f32.xlu1 %v1961_v28  ;;  %v1118_v29 = vpop.xlane.xlu0 %1117 }
 0x356   : > { %v1964_v30 = vpop.eup %1512  ;;  %v1135_v31 = vsub.f32 %v1923_v48, %v1118_v29 }
 0x357   : > { %v1120_v32 = vpop.xlane.xlu1 %1119  ;;  %1176 = vadd.xlane.f32.xlu0 %v1964_v30 }
 0x358   : > { %v1156_v33 = vmul.f32 1.442695, %v1135_v31  ;;  %v1136_v34 = vsub.f32 %v1927_v49, %v1120_v32 }
 0x35a   : > { %1518 = vpow2.f32 %v1156_v33  ;;  %v1158_v35 = vmul.f32 1.442695, %v1136_v34 }
 0x35c   : > { %v1969_v36 = vpop.eup %1514  ;;  %1520 = vpow2.f32 %v1158_v35 }
 0x35d   : > { %1178 = vadd.xlane.f32.xlu1 %v1969_v36  ;;  %v1122_v37 = vpop.xlane.xlu0 %1121 }
 0x35e   : > { %v1972_v38 = vpop.eup %1516  ;;  %v1137_v3 = vsub.f32 %v1931_v53, %v1122_v37 }
 0x35f   : > { %v1124_v5 = vpop.xlane.xlu1 %1123  ;;  %1180 = vadd.xlane.f32.xlu0 %v1972_v38 }
 0x360   : > { %v1160_v41 = vmul.f32 1.442695, %v1137_v3  ;;  %v1138_v42 = vsub.f32 %v1935_v54, %v1124_v5 }
 0x362   : > { %1522 = vpow2.f32 %v1160_v41  ;;  %v1162_v43 = vmul.f32 1.442695, %v1138_v42 }
 0x364   : > { %v1977_v44 = vpop.eup %1518  ;;  %1524 = vpow2.f32 %v1162_v43 }
 0x365   : > { %1182 = vadd.xlane.f32.xlu1 %v1977_v44  ;;  %v1126_v45 = vpop.xlane.xlu0 %1125 }
 0x366   : > { %v1980_v46 = vpop.eup %1520  ;;  %v1139_v47 = vsub.f32 %v1939_v60, %v1126_v45 }
 0x367   : > { %1184 = vadd.xlane.f32.xlu0 %v1980_v46 }
 0x368   : > { %v1164_v48 = vmul.f32 1.442695, %v1139_v47 }
 0x36a   : > { %1526 = vpow2.f32 %v1164_v48 }
 0x36c   : > { %v1984_v49 = vpop.eup %1522 }
 0x36d   : > { %1186 = vadd.xlane.f32.xlu1 %v1984_v49 }
 0x36e   : > { %v1987_v50 = vpop.eup %1524 }
 0x36f   : > { %1188 = vadd.xlane.f32.xlu0 %v1987_v50 }
 0x374   : > { %v1990_v0 = vpop.eup %1526 }
 0x375   : > { %1190 = vadd.xlane.f32.xlu1 %v1990_v0 }
 0x3d2   : > { %v1167_v51 = vpop.xlane.xlu1 %1166 }
 0x3d3   : > { %1528 = vrcp.f32 %v1167_v51 }
 0x3d6   : > { %v1169_v52 = vpop.xlane.xlu0 %1168 }
 0x3d7   : > { %1530 = vrcp.f32 %v1169_v52 }
 0x3da   : > { %v1171_v63 = vpop.xlane.xlu1 %1170 }
 0x3db   : > { %1532 = vrcp.f32 %v1171_v63 }
 0x3dd   : > { %v1529_v2 = vpop.eup %1528 }
 0x3de   : > { %v1218_v53 = vmul.f32 %v1529_v2, %v1945_v13  ;;  %v1173_v54 = vpop.xlane.xlu0 %1172 }
 0x3df   : > { %1534 = vrcp.f32 %v1173_v54 }
 0x3e0   : > { %1231 = vst [vmem:[%s1998_s16] sm:$0xff] %v1218_v53 }
 0x3e1   : > { %v1531_v55 = vpop.eup %1530 }
 0x3e2   : > { %v1219_v56 = vmul.f32 %v1531_v55, %v1949_v16  ;;  %v1175_v57 = vpop.xlane.xlu1 %1174 }
 0x3e3   : > { %1536 = vrcp.f32 %v1175_v57 }
 0x3e4   : > { %1232 = vst [vmem:[%s1998_s16 + $0x8] sm:$0xff] %v1219_v56  ;;  %v1177_v58 = vpop.xlane.xlu0 %1176 }
 0x3e5   : > { %v1533_v59 = vpop.eup %1532  ;;  %1538 = vrcp.f32 %v1177_v58 }
 0x3e6   : > { %v1220_v60 = vmul.f32 %v1533_v59, %v1953_v20 }
 0x3e8   : > { %1233 = vst [vmem:[%s1998_s16 + $0x10] sm:$0xff] %v1220_v60 }
 0x3e9   : > { %v1535_v61 = vpop.eup %1534 }
 0x3ea   : > { %v1221_v62 = vmul.f32 %v1535_v61, %v1957_v24  ;;  %v1179_v1 = vpop.xlane.xlu1 %1178 }
 0x3eb   : > { %1540 = vrcp.f32 %v1179_v1 }
 0x3ec   : > { %1234 = vst [vmem:[%s1998_s16 + $0x18] sm:$0xff] %v1221_v62  ;;  %v1181_v4 = vpop.xlane.xlu0 %1180 }
 0x3ed   : > { %v1537_v6 = vpop.eup %1536  ;;  %1542 = vrcp.f32 %v1181_v4 }
 0x3ee   : > { %v1222_v7 = vmul.f32 %v1537_v6, %v1961_v28 }
 0x3ef   : > { %v1539_v8 = vpop.eup %1538 }
 0x3f0   : > { %1235 = vst [vmem:[%s1998_s16 + $0x20] sm:$0xff] %v1222_v7  ;;  %v1223_v9 = vmul.f32 %v1539_v8, %v1964_v30 }
 0x3f2   : > { %1236 = vst [vmem:[%s1998_s16 + $0x28] sm:$0xff] %v1223_v9  ;;  %v1183_v10 = vpop.xlane.xlu1 %1182 }
 0x3f3   : > { %1544 = vrcp.f32 %v1183_v10 }
 0x3f4   : > { %v1185_v11 = vpop.xlane.xlu0 %1184 }
 0x3f5   : > { %v1541_v12 = vpop.eup %1540  ;;  %1546 = vrcp.f32 %v1185_v11 }
 0x3f6   : > { %v1224_v13 = vmul.f32 %v1541_v12, %v1969_v36 }
 0x3f7   : > { %v1543_v39 = vpop.eup %1542 }
 0x3f8   : > { %1237 = vst [vmem:[%s1998_s16 + $0x30] sm:$0xff] %v1224_v13  ;;  %v1225_v14 = vmul.f32 %v1543_v39, %v1972_v38 }
 0x3fa   : > { %1238 = vst [vmem:[%s1998_s16 + $0x38] sm:$0xff] %v1225_v14  ;;  %v1187_v40 = vpop.xlane.xlu1 %1186 }
 0x3fb   : > { %1548 = vrcp.f32 %v1187_v40 }
 0x3fc   : > { %v1189_v15 = vpop.xlane.xlu0 %1188 }
 0x3fd   : > { %v1545_v16 = vpop.eup %1544  ;;  %1550 = vrcp.f32 %v1189_v15 }
 0x3fe   : > { %v1226_v17 = vmul.f32 %v1545_v16, %v1977_v44 }
 0x3ff   : > { %v1547_v18 = vpop.eup %1546 }
 0x400   : > { %1239 = vst [vmem:[%s1998_s16 + $0x40] sm:$0xff] %v1226_v17  ;;  %v1227_v19 = vmul.f32 %v1547_v18, %v1980_v46 }
 0x402   : > { %1240 = vst [vmem:[%s1998_s16 + $0x48] sm:$0xff] %v1227_v19  ;;  %v1191_v20 = vpop.xlane.xlu1 %1190 }
 0x403   : > { %1552 = vrcp.f32 %v1191_v20 }
 0x405   : > { %v1549_v21 = vpop.eup %1548 }
 0x406   : > { %v1228_v22 = vmul.f32 %v1549_v21, %v1984_v49 }
 0x407   : > { %v1551_v23 = vpop.eup %1550 }
 0x408   : > { %1241 = vst [vmem:[%s1998_s16 + $0x50] sm:$0xff] %v1228_v22  ;;  %v1229_v24 = vmul.f32 %v1551_v23, %v1987_v50 }
 0x40a   : > { %1242 = vst [vmem:[%s1998_s16 + $0x58] sm:$0xff] %v1229_v24 }
 0x40d   : > { %v1553_v25 = vpop.eup %1552 }
 0x40e   : > { %v1230_v26 = vmul.f32 %v1553_v25, %v1990_v0 }
 0x410   : > { %1243 = vst [vmem:[%s1998_s16 + $0x60] sm:$0xff] %v1230_v26 }
 0x411 PF: > { %s17_s24 = sadd.s32 1, %s1560_s24  }
 0x412   : > { %p14_p4 = scmp.ge.s32.totalorder %s17_s24, 4  }
 0x414   :  { %16 = sbr.rel (!%p14_p4) target bundleno = 1 (0x1), region = 78 }

</bundles_post_ra>
